<compile_context>
chip_gen: v7x
topology: tpu7x:2x2x1
jax: 0.10.0
libtpu: 0.0.40
codegen_flags: <defaults>
</compile_context>

<pallas_src>
import functools

import jax
import jax.numpy as jnp
from jax.experimental import pallas as pl
from jax.experimental.pallas import tpu as pltpu


# ----------------------------------------------------------------------------------
# Kernel
# ----------------------------------------------------------------------------------
def _fused_convblock_kernel(x_ref, w1_ref, b1_ref, w2_ref, b2_ref, o_ref, *, H):
    """Fused ConvBlock on one batch tile, fully lane-dense.

    x_ref:  (nb*H, W*Cin)      lane-dense input rows (w-major, channel-minor)
    w1_ref: (3, W*Cin, W*C1)   banded conv1 weights, one matrix per kh tap
    b1_ref: (1, W*C1)          conv1 bias tiled across W (f32)
    w2_ref: (3, W*C1, W*C2)    banded conv2 weights
    b2_ref: (1, W*C2)          conv2 bias tiled across W (f32)
    o_ref:  (nb*H, W*C2)       lane-dense output rows
    """
    x = x_ref[...]

    def conv3x3(inp, w_ref, b_ref):
        mb, wc = inp.shape
        # h-index of every row (images are stacked along the row axis, H rows each).
        h = jax.lax.broadcasted_iota(jnp.int32, (mb, wc), 0) % H
        zero = jnp.zeros_like(inp)
        # kh = 0 tap: row h-1 (zero row at h == 0).  Sublane roll goes through the XLU.
        up = jnp.where(h == 0, zero, pltpu.roll(inp, 1, axis=0))
        # kh = 2 tap: row h+1 (zero row at h == H-1).  shift = mb-1 == roll by -1.
        down = jnp.where(h == H - 1, zero, pltpu.roll(inp, mb - 1, axis=0))
        # The kw taps + width zero-padding live inside the banded weight matrices,
        # so each kh tap is a single lane-dense matmul with f32 accumulation.
        acc = jnp.dot(up, w_ref[0], preferred_element_type=jnp.float32)
        acc = acc + jnp.dot(inp, w_ref[1], preferred_element_type=jnp.float32)
        acc = acc + jnp.dot(down, w_ref[2], preferred_element_type=jnp.float32)
        return acc + b_ref[...]                       # (mb, W*Cout), f32

    y1 = conv3x3(x, w1_ref, b1_ref).astype(x.dtype)   # conv1 activation stays on-chip
    y2 = conv3x3(y1, w2_ref, b2_ref)
    o_ref[...] = y2.astype(o_ref.dtype)               # unmasked lane-dense store


# ----------------------------------------------------------------------------------
# Wrapper helpers
# ----------------------------------------------------------------------------------
def _banded_weight(w_oihw, W):
    """Fold the 3 kw taps + 'same' width padding of a 3x3 conv into 3 banded
    (W*Cin, W*Cout) matrices (one per kh) acting on lane-dense rows:
        y_row[w*Cout + co] += x_row[(w+kw-1)*Cin + ci] * w[co, ci, kh, kw]."""
    wt = jnp.transpose(w_oihw, (2, 3, 1, 0))          # (kh, kw, Cin, Cout)
    mats = []
    for kh in range(3):
        m = None
        for kw in range(3):
            # shift[w+kw-1, w] = 1 for valid taps (out-of-range taps = zero padding).
            shift = jnp.eye(W, W, k=1 - kw, dtype=wt.dtype)
            term = jnp.kron(shift, wt[kh, kw])        # (W*Cin, W*Cout)
            m = term if m is None else m + term
        mats.append(m)
    return jnp.stack(mats, axis=0)                    # (3, W*Cin, W*Cout)


def _tpu_generation():
    try:
        kind = jax.devices()[0].device_kind.lower()
    except Exception:  # pragma: no cover - defensive
        kind = ""
    if "v5 lite" in kind or "v5e" in kind or "v5litepod" in kind:
        return "v5e"
    if "v6" in kind:
        return "v6e"
    if "v7" in kind or "7x" in kind:
        return "v7x"
    return "other"


# (per-step VMEM budget, vmem_limit_bytes passed to the compiler)
_VMEM_BUDGETS = {
    "v5e": (12 << 20, 32 << 20),    # 16 MiB default scoped / 128 MiB physical
    "v6e": (48 << 20, 96 << 20),    # 128 MiB physical: big tiles amortize step cost
    "v7x": (20 << 20, 48 << 20),    # 32 MiB scoped / 64 MiB physical per TC
    "other": (16 << 20, 32 << 20),
}


def _round_up(v, m):
    return (v + m - 1) // m * m


def _pick_batch_tile(N, H, W, Cin, C1, C2, itemsize, vmem_budget, min_steps):
    """Images per grid step.  Honest (8,128)-padded footprint estimate; keep enough
    grid steps for DMA/compute overlap (>= 4/core on v7x) while staying in budget."""
    WCin = _round_up(W * Cin, 128)
    WC1 = _round_up(W * C1, 128)
    WC2 = _round_up(W * C2, 128)
    wbytes = (2 * itemsize * 3 * (WCin * WC1 + WC1 * WC2)   # banded weights (2 bufs)
              + 2 * 4 * (WC1 + WC2))                        # f32 bias rows

    def est(cand):
        rows = _round_up(cand * H, 8)
        return (wbytes
                + 2 * rows * WCin * itemsize                # input block, double buffered
                + 2 * rows * WC2 * itemsize                 # output block, double buffered
                + 3 * rows * (WCin + WC1) * itemsize        # shifted-tap temporaries
                + rows * (WC1 + WC2) * 4)                   # f32 accumulators

    divisors = [d for d in range(1, N + 1) if N % d == 0]
    valid = [d for d in divisors if (d * H) % 8 == 0 or d == N]
    if not valid:
        valid = [N]
    fitting = [d for d in valid if est(d) <= vmem_budget]
    if not fitting:
        return min(valid)
    want = [d for d in fitting if (N // d) >= min(min_steps, N)]
    return max(want) if want else min(fitting)


# ----------------------------------------------------------------------------------
# Forward
# ----------------------------------------------------------------------------------
@functools.partial(jax.jit, static_argnames=("compute_dtype",))
def conv_block_forward(x_nchw, w1, b1, w2, b2, *, compute_dtype=jnp.float32):
    """ConvBlock.forward: Conv2d(3x3, pad=1) -> Conv2d(3x3, pad=1).  NCHW in/out."""
    N, Cin, H, W = x_nchw.shape
    C1 = w1.shape[0]
    C2 = w2.shape[0]
    cd = jnp.dtype(compute_dtype)

    # NCHW -> lane-dense (N*H, W*Cin) rows (channel is the lane-minor sub-index).
    x2 = jnp.transpose(x_nchw, (0, 2, 3, 1)).reshape(N * H, W * Cin).astype(cd)
    bw1 = _banded_weight(w1.astype(cd), W)              # (3, W*Cin, W*C1)
    bw2 = _banded_weight(w2.astype(cd), W)              # (3, W*C1, W*C2)
    b1r = jnp.tile(b1.astype(jnp.float32), W)[None, :]  # (1, W*C1)
    b2r = jnp.tile(b2.astype(jnp.float32), W)[None, :]  # (1, W*C2)

    gen = _tpu_generation()
    budget, vmem_limit = _VMEM_BUDGETS[gen]
    min_steps = 8 if gen == "v7x" else 4                # >= 4 steps per TC on v7x
    nb = _pick_batch_tile(N, H, W, Cin, C1, C2, cd.itemsize, budget, min_steps)
    grid = (N // nb,)
    mb = nb * H

    out = pl.pallas_call(
        functools.partial(_fused_convblock_kernel, H=H),
        out_shape=jax.ShapeDtypeStruct((N * H, W * C2), cd),
        grid=grid,
        in_specs=[
            pl.BlockSpec((mb, W * Cin), lambda n: (n, 0)),
            pl.BlockSpec((3, W * Cin, W * C1), lambda n: (0, 0, 0)),
            pl.BlockSpec((1, W * C1), lambda n: (0, 0)),
            pl.BlockSpec((3, W * C1, W * C2), lambda n: (0, 0, 0)),
            pl.BlockSpec((1, W * C2), lambda n: (0, 0)),
        ],
        out_specs=pl.BlockSpec((mb, W * C2), lambda n: (n, 0)),
        compiler_params=pltpu.CompilerParams(
            dimension_semantics=("parallel",),
            vmem_limit_bytes=vmem_limit),
    )(x2, bw1, b1r, bw2, b2r)

    # TODO(synk): if the surrounding model consumes NHWC / lane-dense activations,
    # drop these HBM transposes and hand the (N*H, W*C2) slab to the next op directly.
    y = out.reshape(N, H, W, C2).astype(x_nchw.dtype)
    return jnp.transpose(y, (0, 3, 1, 2))               # NHWC -> NCHW


def _reference_forward(x_nchw, w1, b1, w2, b2):
    """Pure-JAX reference (lax conv) for correctness checking."""
    dn = ("NCHW", "OIHW", "NCHW")
    y = jax.lax.conv_general_dilated(x_nchw, w1, (1, 1), "SAME", dimension_numbers=dn)
    y = y + b1[None, :, None, None]
    y = jax.lax.conv_general_dilated(y, w2, (1, 1), "SAME", dimension_numbers=dn)
    y = y + b2[None, :, None, None]
    return y


if __name__ == "__main__":
    # Small shapes consistent with the module: batch=2, in_channels=4,
    # out_channels=8, spatial=16x16.
    N, Cin, Cout, H, W = 2, 4, 8, 16, 16

    key = jax.random.PRNGKey(0)
    kx, kw1, kb1, kw2, kb2 = jax.random.split(key, 5)

    x = jax.random.normal(kx, (N, Cin, H, W), dtype=jnp.float32)
    # Deterministic synthetic parameters (PyTorch Conv2d weight/bias shapes).
    w1 = 0.1 * jax.random.normal(kw1, (Cout, Cin, 3, 3), dtype=jnp.float32)
    b1 = 0.1 * jax.random.normal(kb1, (Cout,), dtype=jnp.float32)
    w2 = 0.1 * jax.random.normal(kw2, (Cout, Cout, 3, 3), dtype=jnp.float32)
    b2 = 0.1 * jax.random.normal(kb2, (Cout,), dtype=jnp.float32)

    out = conv_block_forward(x, w1, b1, w2, b2)
    out = jax.block_until_ready(out)

    ref = _reference_forward(x, w1, b1, w2, b2)
    assert out.shape == (N, Cout, H, W), out.shape
    assert jnp.allclose(out, ref, atol=1e-4, rtol=1e-4), "mismatch vs reference conv"

    print("KERNEL_OK")
</pallas_src>

<mosaic_0001>
module attributes {stable_mosaic.version = 11 : i64} {
  func.func @_fused_convblock_kernel(%arg0: i32, %arg1: memref<16x64xf32, #tpu.memory_space<vmem>>, %arg2: memref<3x64x128xf32, #tpu.memory_space<vmem>>, %arg3: memref<1x128xf32, #tpu.memory_space<vmem>>, %arg4: memref<3x128x128xf32, #tpu.memory_space<vmem>>, %arg5: memref<1x128xf32, #tpu.memory_space<vmem>>, %arg6: memref<16x128xf32, #tpu.memory_space<vmem>>) attributes {dimension_semantics = [#tpu.dimension_semantics<parallel>], iteration_bounds = array<i64: 2>, scalar_prefetch = 0 : i64, scratch_operands = 0 : i64, tpu.core_type = #tpu.core_type<tc>, window_params = [{transform_indices = @transform_0, window_bounds = array<i64: 16, 64>}, {pipeline_mode = #tpu.pipeline_mode<synchronous>, transform_indices = @transform_1, window_bounds = array<i64: 3, 64, 128>}, {pipeline_mode = #tpu.pipeline_mode<synchronous>, transform_indices = @transform_2, window_bounds = array<i64: 1, 128>}, {pipeline_mode = #tpu.pipeline_mode<synchronous>, transform_indices = @transform_3, window_bounds = array<i64: 3, 128, 128>}, {pipeline_mode = #tpu.pipeline_mode<synchronous>, transform_indices = @transform_4, window_bounds = array<i64: 1, 128>}, {transform_indices = @transform_5, window_bounds = array<i64: 16, 128>}]} {
    %c0 = arith.constant 0 : index
    %c0_0 = arith.constant 0 : index
    %0 = vector.load %arg1[%c0, %c0_0] : memref<16x64xf32, #tpu.memory_space<vmem>>, vector<16x64xf32>
    %1 = tpu.iota {dimensions = array<i32: 0>} : vector<16x64xi32>
    %c16_i32 = arith.constant 16 : i32
    %c0_i32 = arith.constant 0 : i32
    %2 = arith.cmpi eq, %c16_i32, %c0_i32 : i32
    %c1_i32 = arith.constant 1 : i32
    %3 = arith.select %2, %c1_i32, %c16_i32 : i32
    %4 = vector.broadcast %3 : i32 to vector<16x64xi32>
    %5 = arith.remsi %1, %4 : vector<16x64xi32>
    %c0_i32_1 = arith.constant 0 : i32
    %6 = vector.broadcast %c0_i32_1 : i32 to vector<16x64xi32>
    %7 = arith.cmpi ne, %5, %6 : vector<16x64xi32>
    %c0_i32_2 = arith.constant 0 : i32
    %8 = vector.broadcast %c0_i32_2 : i32 to vector<16x64xi32>
    %9 = arith.cmpi slt, %5, %8 : vector<16x64xi32>
    %c0_i32_3 = arith.constant 0 : i32
    %10 = arith.cmpi slt, %3, %c0_i32_3 : i32
    %11 = vector.broadcast %10 : i1 to vector<16x64xi1>
    %12 = vector.broadcast %11 : vector<16x64xi1> to vector<16x64xi1>
    %13 = arith.xori %9, %12 : vector<16x64xi1>
    %14 = arith.andi %13, %7 : vector<16x64xi1>
    %15 = vector.broadcast %3 : i32 to vector<16x64xi32>
    %16 = arith.addi %5, %15 : vector<16x64xi32>
    %17 = arith.select %14, %16, %5 : vector<16x64xi1>, vector<16x64xi32>
    %cst = arith.constant 0.000000e+00 : f32
    %18 = vector.broadcast %cst : f32 to vector<16x64xf32>
    %c0_i32_4 = arith.constant 0 : i32
    %19 = vector.broadcast %c0_i32_4 : i32 to vector<16x64xi32>
    %20 = arith.cmpi eq, %17, %19 : vector<16x64xi32>
    %c1_i32_5 = arith.constant 1 : i32
    %21 = tpu.dynamic_rotate %0 by %c1_i32_5 dim 0 : vector<16x64xf32>, i32 -> vector<16x64xf32>
    %22 = arith.select %20, %18, %21 : vector<16x64xi1>, vector<16x64xf32>
    %c15_i32 = arith.constant 15 : i32
    %23 = vector.broadcast %c15_i32 : i32 to vector<16x64xi32>
    %24 = arith.cmpi eq, %17, %23 : vector<16x64xi32>
    %c15_i32_6 = arith.constant 15 : i32
    %25 = tpu.dynamic_rotate %0 by %c15_i32_6 dim 0 : vector<16x64xf32>, i32 -> vector<16x64xf32>
    %26 = arith.select %24, %18, %25 : vector<16x64xi1>, vector<16x64xf32>
    %c0_7 = arith.constant 0 : index
    %c0_8 = arith.constant 0 : index
    %c0_9 = arith.constant 0 : index
    %27 = vector.load %arg2[%c0_7, %c0_8, %c0_9] : memref<3x64x128xf32, #tpu.memory_space<vmem>>, vector<1x64x128xf32>
    %28 = vector.shape_cast %27 : vector<1x64x128xf32> to vector<64x128xf32>
    %cst_10 = arith.constant dense<0.000000e+00> : vector<16x128xf32>
    %29 = tpu.matmul %22, %28, %cst_10 {dimension_numbers = #tpu.dot_dimension_numbers<[1], [0], [0], [1], [0, 0, 1, 1], [], []>} : vector<16x64xf32>, vector<64x128xf32>, vector<16x128xf32> -> vector<16x128xf32>
    %c1 = arith.constant 1 : index
    %c0_11 = arith.constant 0 : index
    %c0_12 = arith.constant 0 : index
    %30 = vector.load %arg2[%c1, %c0_11, %c0_12] : memref<3x64x128xf32, #tpu.memory_space<vmem>>, vector<1x64x128xf32>
    %31 = vector.shape_cast %30 : vector<1x64x128xf32> to vector<64x128xf32>
    %cst_13 = arith.constant dense<0.000000e+00> : vector<16x128xf32>
    %32 = tpu.matmul %0, %31, %cst_13 {dimension_numbers = #tpu.dot_dimension_numbers<[1], [0], [0], [1], [0, 0, 1, 1], [], []>} : vector<16x64xf32>, vector<64x128xf32>, vector<16x128xf32> -> vector<16x128xf32>
    %33 = arith.addf %29, %32 : vector<16x128xf32>
    %c2 = arith.constant 2 : index
    %c0_14 = arith.constant 0 : index
    %c0_15 = arith.constant 0 : index
    %34 = vector.load %arg2[%c2, %c0_14, %c0_15] : memref<3x64x128xf32, #tpu.memory_space<vmem>>, vector<1x64x128xf32>
    %35 = vector.shape_cast %34 : vector<1x64x128xf32> to vector<64x128xf32>
    %cst_16 = arith.constant dense<0.000000e+00> : vector<16x128xf32>
    %36 = tpu.matmul %26, %35, %cst_16 {dimension_numbers = #tpu.dot_dimension_numbers<[1], [0], [0], [1], [0, 0, 1, 1], [], []>} : vector<16x64xf32>, vector<64x128xf32>, vector<16x128xf32> -> vector<16x128xf32>
    %37 = arith.addf %33, %36 : vector<16x128xf32>
    %c0_17 = arith.constant 0 : index
    %c0_18 = arith.constant 0 : index
    %38 = vector.load %arg3[%c0_17, %c0_18] : memref<1x128xf32, #tpu.memory_space<vmem>>, vector<1x128xf32>
    %39 = vector.broadcast %38 : vector<1x128xf32> to vector<16x128xf32>
    %40 = arith.addf %37, %39 : vector<16x128xf32>
    %41 = tpu.iota {dimensions = array<i32: 0>} : vector<16x128xi32>
    %c16_i32_19 = arith.constant 16 : i32
    %c0_i32_20 = arith.constant 0 : i32
    %42 = arith.cmpi eq, %c16_i32_19, %c0_i32_20 : i32
    %c1_i32_21 = arith.constant 1 : i32
    %43 = arith.select %42, %c1_i32_21, %c16_i32_19 : i32
    %44 = vector.broadcast %43 : i32 to vector<16x128xi32>
    %45 = arith.remsi %41, %44 : vector<16x128xi32>
    %c0_i32_22 = arith.constant 0 : i32
    %46 = vector.broadcast %c0_i32_22 : i32 to vector<16x128xi32>
    %47 = arith.cmpi ne, %45, %46 : vector<16x128xi32>
    %c0_i32_23 = arith.constant 0 : i32
    %48 = vector.broadcast %c0_i32_23 : i32 to vector<16x128xi32>
    %49 = arith.cmpi slt, %45, %48 : vector<16x128xi32>
    %c0_i32_24 = arith.constant 0 : i32
    %50 = arith.cmpi slt, %43, %c0_i32_24 : i32
    %51 = vector.broadcast %50 : i1 to vector<16x128xi1>
    %52 = vector.broadcast %51 : vector<16x128xi1> to vector<16x128xi1>
    %53 = arith.xori %49, %52 : vector<16x128xi1>
    %54 = arith.andi %53, %47 : vector<16x128xi1>
    %55 = vector.broadcast %43 : i32 to vector<16x128xi32>
    %56 = arith.addi %45, %55 : vector<16x128xi32>
    %57 = arith.select %54, %56, %45 : vector<16x128xi1>, vector<16x128xi32>
    %cst_25 = arith.constant 0.000000e+00 : f32
    %58 = vector.broadcast %cst_25 : f32 to vector<16x128xf32>
    %c0_i32_26 = arith.constant 0 : i32
    %59 = vector.broadcast %c0_i32_26 : i32 to vector<16x128xi32>
    %60 = arith.cmpi eq, %57, %59 : vector<16x128xi32>
    %c1_i32_27 = arith.constant 1 : i32
    %61 = tpu.dynamic_rotate %40 by %c1_i32_27 dim 0 : vector<16x128xf32>, i32 -> vector<16x128xf32>
    %62 = arith.select %60, %58, %61 : vector<16x128xi1>, vector<16x128xf32>
    %c15_i32_28 = arith.constant 15 : i32
    %63 = vector.broadcast %c15_i32_28 : i32 to vector<16x128xi32>
    %64 = arith.cmpi eq, %57, %63 : vector<16x128xi32>
    %c15_i32_29 = arith.constant 15 : i32
    %65 = tpu.dynamic_rotate %40 by %c15_i32_29 dim 0 : vector<16x128xf32>, i32 -> vector<16x128xf32>
    %66 = arith.select %64, %58, %65 : vector<16x128xi1>, vector<16x128xf32>
    %c0_30 = arith.constant 0 : index
    %c0_31 = arith.constant 0 : index
    %c0_32 = arith.constant 0 : index
    %67 = vector.load %arg4[%c0_30, %c0_31, %c0_32] : memref<3x128x128xf32, #tpu.memory_space<vmem>>, vector<1x128x128xf32>
    %68 = vector.shape_cast %67 : vector<1x128x128xf32> to vector<128x128xf32>
    %cst_33 = arith.constant dense<0.000000e+00> : vector<16x128xf32>
    %69 = tpu.matmul %62, %68, %cst_33 {dimension_numbers = #tpu.dot_dimension_numbers<[1], [0], [0], [1], [0, 0, 1, 1], [], []>} : vector<16x128xf32>, vector<128x128xf32>, vector<16x128xf32> -> vector<16x128xf32>
    %c1_34 = arith.constant 1 : index
    %c0_35 = arith.constant 0 : index
    %c0_36 = arith.constant 0 : index
    %70 = vector.load %arg4[%c1_34, %c0_35, %c0_36] : memref<3x128x128xf32, #tpu.memory_space<vmem>>, vector<1x128x128xf32>
    %71 = vector.shape_cast %70 : vector<1x128x128xf32> to vector<128x128xf32>
    %cst_37 = arith.constant dense<0.000000e+00> : vector<16x128xf32>
    %72 = tpu.matmul %40, %71, %cst_37 {dimension_numbers = #tpu.dot_dimension_numbers<[1], [0], [0], [1], [0, 0, 1, 1], [], []>} : vector<16x128xf32>, vector<128x128xf32>, vector<16x128xf32> -> vector<16x128xf32>
    %73 = arith.addf %69, %72 : vector<16x128xf32>
    %c2_38 = arith.constant 2 : index
    %c0_39 = arith.constant 0 : index
    %c0_40 = arith.constant 0 : index
    %74 = vector.load %arg4[%c2_38, %c0_39, %c0_40] : memref<3x128x128xf32, #tpu.memory_space<vmem>>, vector<1x128x128xf32>
    %75 = vector.shape_cast %74 : vector<1x128x128xf32> to vector<128x128xf32>
    %cst_41 = arith.constant dense<0.000000e+00> : vector<16x128xf32>
    %76 = tpu.matmul %66, %75, %cst_41 {dimension_numbers = #tpu.dot_dimension_numbers<[1], [0], [0], [1], [0, 0, 1, 1], [], []>} : vector<16x128xf32>, vector<128x128xf32>, vector<16x128xf32> -> vector<16x128xf32>
    %77 = arith.addf %73, %76 : vector<16x128xf32>
    %c0_42 = arith.constant 0 : index
    %c0_43 = arith.constant 0 : index
    %78 = vector.load %arg5[%c0_42, %c0_43] : memref<1x128xf32, #tpu.memory_space<vmem>>, vector<1x128xf32>
    %79 = vector.broadcast %78 : vector<1x128xf32> to vector<16x128xf32>
    %80 = arith.addf %77, %79 : vector<16x128xf32>
    %c0_44 = arith.constant 0 : index
    %c0_45 = arith.constant 0 : index
    %81 = vector.load %arg6[%c0_44, %c0_45] : memref<16x128xf32, #tpu.memory_space<vmem>>, vector<16x128xf32>
    tpu.vector_store %arg6[%c0_44, %c0_45], %80 {strides = array<i32>} : memref<16x128xf32, #tpu.memory_space<vmem>>, vector<16x128xf32>,
    return
  }
  func.func @transform_0(%arg0: i32) -> (i32, i32) {
    %c0_i32 = arith.constant 0 : i32
    %c0_i32_0 = arith.constant 0 : i32
    return %arg0, %c0_i32 : i32, i32
  }
  func.func @transform_1(%arg0: i32) -> (i32, i32, i32) {
    %c0_i32 = arith.constant 0 : i32
    %c0_i32_0 = arith.constant 0 : i32
    %c0_i32_1 = arith.constant 0 : i32
    %c0_i32_2 = arith.constant 0 : i32
    return %c0_i32, %c0_i32_0, %c0_i32_1 : i32, i32, i32
  }
  func.func @transform_2(%arg0: i32) -> (i32, i32) {
    %c0_i32 = arith.constant 0 : i32
    %c0_i32_0 = arith.constant 0 : i32
    %c0_i32_1 = arith.constant 0 : i32
    return %c0_i32, %c0_i32_0 : i32, i32
  }
  func.func @transform_3(%arg0: i32) -> (i32, i32, i32) {
    %c0_i32 = arith.constant 0 : i32
    %c0_i32_0 = arith.constant 0 : i32
    %c0_i32_1 = arith.constant 0 : i32
    %c0_i32_2 = arith.constant 0 : i32
    return %c0_i32, %c0_i32_0, %c0_i32_1 : i32, i32, i32
  }
  func.func @transform_4(%arg0: i32) -> (i32, i32) {
    %c0_i32 = arith.constant 0 : i32
    %c0_i32_0 = arith.constant 0 : i32
    %c0_i32_1 = arith.constant 0 : i32
    return %c0_i32, %c0_i32_0 : i32, i32
  }
  func.func @transform_5(%arg0: i32) -> (i32, i32) {
    %c0_i32 = arith.constant 0 : i32
    %c0_i32_0 = arith.constant 0 : i32
    return %arg0, %c0_i32 : i32, i32
  }
}

</mosaic_0001>

<bundles_post_ra>
// kernel: tile.13
= control target key start
LH: loop header
LB: loop body
LE: loop exit
PB: predicated region body
PF: predicated region fallthrough
CT: control target
= control target key end

     0   :  { %s28_s0 = inlined_call_operand.vmem [shape: f32[8], index: 0, kind: input, shape index: {}]   ;;  %s29_s1 = inlined_call_operand.vmem [shape: f32[16,8], index: 1, kind: output, shape index: {}]  }
   0x1   :  { %v4_v0 = vld [vmem:[%s28_s0] ss:$0 sm:$0xff] }
   0x2   :  { %5 = vst [vmem:[%s29_s1] sm:$0xff] %v4_v0  ;;  %8 = vst [vmem:[%s29_s1 + $0x8] sm:$0xff] %v4_v0 }

// kernel: tile.14
= control target key start
LH: loop header
LB: loop body
LE: loop exit
PB: predicated region body
PF: predicated region fallthrough
CT: control target
= control target key end

     0   :  { %s131_s10 = smov 120   ;;  %s132_s11 = smov 104   ;;  %vm3_vm0 = vcmask 64512   ;;  %vm9_vm1 = vcmask 1048512   ;;  %vm15_vm2 = vcmask 982912   ;;  %vm21_vm3 = vcmask 917312   ;;  %s207_s0 = inlined_call_operand.vmem [shape: f32[16,8], index: 0, kind: input, shape index: {}]   ;;  %s208_s1 = inlined_call_operand.vmem [shape: f32[1,128], index: 1, kind: output, shape index: {}]  }
   0x1   :  { %v101_v0 = vld [vmem:[%s207_s0 + $0xf] sm:$0x1]   ;;  %v103_v1 = vld [vmem:[%s207_s0 + $0xd] sm:$0x1]   ;;  %v102_v2 = vld [vmem:[%s207_s0 + $0xe] sm:$0x1]  }
   0x2   :  { %7 = vrot.lane.b32.xlu0 %v101_v0, %s131_s10  ;;  %19 = vrot.lane.b32.xlu1 %v103_v1, %s132_s11  ;;  %v104_v3 = vld [vmem:[%s207_s0 + $0xc] sm:$0x1]   ;;  %s133_s16 = smov 112   ;;  %s134_s17 = smov 96   ;;  %v105_v4 = vld [vmem:[%s207_s0 + $0xb] sm:$0x1]  }
   0x3   :  { %v106_v5 = vld [vmem:[%s207_s0 + $0xa] sm:$0x1]   ;;  %v2_v6 = vld [vmem:[%s207_s0] sm:$0x1]   ;;  %s135_s24 = smov 88   ;;  %s136_s25 = smov 80  }
   0x4   :  { %4 = vst.msk [vmem:[#allocation0] sm:$0x1] %vm3_vm0, %v2_v6   ;;  %v107_v7 = vld [vmem:[%s207_s0 + $0x9] sm:$0x1]   ;;  %v108_v8 = vld [vmem:[%s207_s0 + $0x8] sm:$0x1]  }
   0x5   :  { %s137_s30 = smov 72   ;;  %s138_s2 = smov 64   ;;  %v109_v9 = vld [vmem:[%s207_s0 + $0x7] sm:$0x1]   ;;  %v110_v10 = vld [vmem:[%s207_s0 + $0x6] sm:$0x1]  }
   0x6   :  { %13 = vrot.lane.b32.xlu0 %v102_v2, %s133_s16  ;;  %25 = vrot.lane.b32.xlu1 %v104_v3, %s134_s17  ;;  %s139_s7 = smov 56   ;;  %s140_s8 = smov 48   ;;  %v111_v11 = vld [vmem:[%s207_s0 + $0x5] sm:$0x1]   ;;  %v112_v12 = vld [vmem:[%s207_s0 + $0x4] sm:$0x1]  }
   0x7   :  { %s141_s13 = smov 40   ;;  %s142_s14 = smov 32   ;;  %v113_v13 = vld [vmem:[%s207_s0 + $0x3] sm:$0x1]   ;;  %v114_v14 = vld [vmem:[%s207_s0 + $0x2] sm:$0x1]  }
   0x8   :  { %s143_s19 = smov 24   ;;  %s144_s20 = smov 16   ;;  %v115_v15 = vld [vmem:[%s207_s0 + $0x1] sm:$0x1]   ;;  %vm27_vm4 = vcmask 851712   ;;  %vm33_vm5 = vcmask 786112  }
   0x9   :  { %s145_s0 = smov 8   ;;  %vm39_vm6 = vcmask 720512   ;;  %vm45_vm7 = vcmask 654912   ;;  %vm51_vm8 = vcmask 589312   ;;  %vm57_vm9 = vcmask 523712  }
   0xa   :  { %31 = vrot.lane.b32.xlu0 %v105_v4, %s135_s24  ;;  %37 = vrot.lane.b32.xlu1 %v106_v5, %s136_s25  ;;  %vm63_vm10 = vcmask 458112   ;;  %vm69_vm11 = vcmask 392512   ;;  %vm75_vm12 = vcmask 326912   ;;  %vm81_vm13 = vcmask 261312  }
   0xb   :  { %vm87_vm14 = vcmask 195712   ;;  %vm93_vm15 = vcmask 130112  }
   0xe   :  { %43 = vrot.lane.b32.xlu0 %v107_v7, %s137_s30  ;;  %49 = vrot.lane.b32.xlu1 %v108_v8, %s138_s2 }
  0x12   :  { %55 = vrot.lane.b32.xlu0 %v109_v9, %s139_s7  ;;  %61 = vrot.lane.b32.xlu1 %v110_v10, %s140_s8 }
  0x16   :  { %67 = vrot.lane.b32.xlu0 %v111_v11, %s141_s13  ;;  %73 = vrot.lane.b32.xlu1 %v112_v12, %s142_s14 }
  0x1a   :  { %79 = vrot.lane.b32.xlu0 %v113_v13, %s143_s19  ;;  %85 = vrot.lane.b32.xlu1 %v114_v14, %s144_s20 }
  0x1e   :  { %91 = vrot.lane.b32.xlu0 %v115_v15, %s145_s0 }
  0x74   :  { %v8_v16 = vpop.permute.xlu0 %7   ;;  %v20_v17 = vpop.permute.xlu1 %19  }
  0x75   :  { %10 = vst.msk [vmem:[#allocation0] sm:$0x1] %vm9_vm1, %v8_v16  }
  0x78   :  { %v14_v18 = vpop.permute.xlu0 %13   ;;  %v26_v19 = vpop.permute.xlu1 %25  }
  0x79   :  { %16 = vst.msk [vmem:[#allocation0] sm:$0x1] %vm15_vm2, %v14_v18  }
  0x7a   :  { %22 = vst.msk [vmem:[#allocation0] sm:$0x1] %vm21_vm3, %v20_v17  }
  0x7b   :  { %28 = vst.msk [vmem:[#allocation0] sm:$0x1] %vm27_vm4, %v26_v19  }
  0x7c   :  { %v32_v20 = vpop.permute.xlu0 %31   ;;  %v38_v21 = vpop.permute.xlu1 %37  }
  0x7d   :  { %34 = vst.msk [vmem:[#allocation0] sm:$0x1] %vm33_vm5, %v32_v20  }
  0x7e   :  { %40 = vst.msk [vmem:[#allocation0] sm:$0x1] %vm39_vm6, %v38_v21  }
  0x80   :  { %v44_v22 = vpop.permute.xlu0 %43   ;;  %v50_v23 = vpop.permute.xlu1 %49  }
  0x81   :  { %46 = vst.msk [vmem:[#allocation0] sm:$0x1] %vm45_vm7, %v44_v22  }
  0x82   :  { %52 = vst.msk [vmem:[#allocation0] sm:$0x1] %vm51_vm8, %v50_v23  }
  0x84   :  { %v56_v24 = vpop.permute.xlu0 %55   ;;  %v62_v25 = vpop.permute.xlu1 %61  }
  0x85   :  { %58 = vst.msk [vmem:[#allocation0] sm:$0x1] %vm57_vm9, %v56_v24  }
  0x86   :  { %64 = vst.msk [vmem:[#allocation0] sm:$0x1] %vm63_vm10, %v62_v25  }
  0x88   :  { %v68_v26 = vpop.permute.xlu0 %67   ;;  %v74_v27 = vpop.permute.xlu1 %73  }
  0x89   :  { %70 = vst.msk [vmem:[#allocation0] sm:$0x1] %vm69_vm11, %v68_v26  }
  0x8a   :  { %76 = vst.msk [vmem:[#allocation0] sm:$0x1] %vm75_vm12, %v74_v27  }
  0x8c   :  { %v80_v28 = vpop.permute.xlu0 %79   ;;  %v86_v29 = vpop.permute.xlu1 %85  }
  0x8d   :  { %82 = vst.msk [vmem:[#allocation0] sm:$0x1] %vm81_vm13, %v80_v28  }
  0x8e   :  { %88 = vst.msk [vmem:[#allocation0] sm:$0x1] %vm87_vm14, %v86_v29  }
  0x90   :  { %v92_v30 = vpop.permute.xlu0 %91  }
  0x91   :  { %94 = vst.msk [vmem:[#allocation0] sm:$0x1] %vm93_vm15, %v92_v30  }
  0x98   :  { %v98_v31 = vld [vmem:[#allocation0] sm:$0x1] }
  0x99   :  { %100 = vst [vmem:[%s208_s1] sm:$0x1] %v98_v31 }

// kernel: conv_block_forward.1
= control target key start
LH: loop header
LB: loop body
LE: loop exit
PB: predicated region body
PF: predicated region fallthrough
CT: control target
= control target key end

     0   :  { %s1427_s18 = smov 0   ;;  %s1735_s0 = inlined_call_operand.vmem [shape: f32[32,64], index: 0, kind: input, shape index: {}]   ;;  %s1736_s1 = inlined_call_operand.vmem [shape: f32[3,64,128], index: 1, kind: input, shape index: {}]   ;;  %s1737_s2 = inlined_call_operand.vmem [shape: f32[1,128], index: 2, kind: input, shape index: {}]   ;;  %s1738_s3 = inlined_call_operand.vmem [shape: f32[3,128,128], index: 3, kind: input, shape index: {}]   ;;  %s1739_s4 = inlined_call_operand.vmem [shape: f32[1,128], index: 4, kind: input, shape index: {}]   ;;  %s1740_s5 = inlined_call_operand.vmem [shape: f32[32,128], index: 5, kind: output, shape index: {}]  }
   0x1 LB: > { %s912_s19 = sadd.s32 4294967295, %s1395_s18   ;;  %p916_p0 = scmp.ge.s32.totalorder %s1395_s18, 1  ;;  %s1395_s18 = sphi %s1427_s18, %s15_s18  }
   0x2   : > { %p188_p1 = scmp.lt.s32.totalorder %s1395_s18, 3 }
   0x4   : > { %p189_p2 = pnand %p916_p0, %p188_p1 }
   0x5   : > { %v921_v0 = vld [vmem:[%s1736_s1 + $0x40] sm:$0xff] (!%p189_p2)  ;;  %v922_v1 = vld [vmem:[%s1736_s1 + $0x48] sm:$0xff] (!%p189_p2)  ;;  %v923_v2 = vld [vmem:[%s1736_s1 + $0x50] sm:$0xff] (!%p189_p2)  ;;  %s917_s26 = sshll.u32 (!%p189_p2), %s912_s19, 1  ;;  %v230_v8 = vlaneseq (!%p189_p2)  ;;  %vm292_vm0 = vcmask (!%p189_p2), 523264  }
   0x6   : > { %192 = sbr.rel (%p189_p2) target bundleno = 525 (0x20d), region = 40  ;;  %v1229_v3 = vpack.c.bf16 (!%p189_p2), %v922_v1, %v921_v0  ;;  %v924_v4 = vld [vmem:[%s1736_s1 + $0x58] sm:$0xff] (!%p189_p2)  ;;  %p217_p3 = scmp.lt.s32.totalorder (!%p189_p2), %s917_s26, 3  ;;  %v925_v6 = vld [vmem:[%s1736_s1 + $0x60] sm:$0xff] (!%p189_p2)  ;;  %v926_v7 = vld [vmem:[%s1736_s1 + $0x68] sm:$0xff] (!%p189_p2) }
   0x7   : > { %v1233_v5 = vpack.c.bf16 (!%p189_p2), %v924_v4, %v923_v2  ;;  %v1237_v9 = vpack.c.bf16 (!%p189_p2), %v926_v7, %v925_v6  ;;  %v927_v10 = vld [vmem:[%s1736_s1 + $0x70] sm:$0xff] (!%p189_p2)  ;;  %v928_v11 = vld [vmem:[%s1736_s1 + $0x78] sm:$0xff] (!%p189_p2)  ;;  %v1467_v12 = vshrl.u32 (!%p189_p2), %v230_v8, 7  ;;  %v568_v16 = vld [vmem:[%s1738_s3] sm:$0xff] (!%p189_p2) }
   0x8   : > { %1230 = vmatprep.subr.bf16.mxu0 (!%p189_p2), %v1229_v3  ;;  %v1241_v14 = vpack.c.bf16 (!%p189_p2), %v928_v11, %v927_v10  ;;  %v275_v18 = vld [vmem:[%s1736_s1] sm:$0xff] (!%p189_p2)  ;;  %v276_v19 = vld [vmem:[%s1736_s1 + $0x8] sm:$0xff] (!%p189_p2)  ;;  %v570_v24 = vld [vmem:[%s1738_s3 + $0x10] sm:$0xff] (!%p189_p2) }
   0x9   : > { %1232 = vmatpush3.bf16.msra.mxu0 (!%p189_p2), %v1229_v3  ;;  %v237_v21 = vand.u32 (!%p189_p2), 15, %v1467_v12  ;;  %v569_v22 = vld [vmem:[%s1738_s3 + $0x8] sm:$0xff] (!%p189_p2)  ;;  %vm261_vm1 = vcmp.lt.s32.totalorder (!%p189_p2), %v1467_v12, 1  ;;  %v571_v25 = vld [vmem:[%s1738_s3 + $0x18] sm:$0xff] (!%p189_p2)  ;;  %v572_v27 = vld [vmem:[%s1738_s3 + $0x20] sm:$0xff] (!%p189_p2)  ;;  %v1245_v29 = vpack.c.bf16 (!%p189_p2), %v276_v19, %v275_v18  ;;  %vm270_vm3 = vcmp.lt.s32.totalorder (!%p189_p2), %v1467_v12, 7 }
   0xa   : > { %1234 = vmatprep.subr.bf16.mxu0 (!%p189_p2), %v1233_v5  ;;  %v1309_v23 = vpack.c.bf16 (!%p189_p2), %v569_v22, %v568_v16  ;;  %v1313_v26 = vpack.c.bf16 (!%p189_p2), %v571_v25, %v570_v24  ;;  %v573_v28 = vld [vmem:[%s1738_s3 + $0x28] sm:$0xff] (!%p189_p2)  ;;  %v277_v30 = vld [vmem:[%s1736_s1 + $0x10] sm:$0xff] (!%p189_p2)  ;;  %v278_v31 = vld [vmem:[%s1736_s1 + $0x18] sm:$0xff] (!%p189_p2)  ;;  %v232_v4 = vadd.s32 (!%p189_p2), 8, %v1467_v12 }
   0xb   : > { %vm1509_vm2 = vcmp.eq.s32.totalorder (!%p189_p2), %v237_v21, 0  ;;  %v1317_v34 = vpack.c.bf16 (!%p189_p2), %v573_v28, %v572_v27  ;;  %v574_v35 = vld [vmem:[%s1738_s3 + $0x30] sm:$0xff] (!%p189_p2)  ;;  %v575_v36 = vld [vmem:[%s1738_s3 + $0x38] sm:$0xff] (!%p189_p2)  ;;  %v1249_v37 = vpack.c.bf16 (!%p189_p2), %v278_v31, %v277_v30  ;;  %v279_v39 = vld [vmem:[%s1736_s1 + $0x20] sm:$0xff] (!%p189_p2) }
   0xc   : > { %1310 = vmatprep.subr.bf16.mxu1 (!%p189_p2), %v1309_v23  ;;  %v280_v40 = vld [vmem:[%s1736_s1 + $0x28] sm:$0xff] (!%p189_p2)  ;;  %v1321_v41 = vpack.c.bf16 (!%p189_p2), %v575_v36, %v574_v35  ;;  %v576_v42 = vld [vmem:[%s1738_s3 + $0x40] sm:$0xff] (!%p189_p2)  ;;  %v281_v45 = vld [vmem:[%s1736_s1 + $0x30] sm:$0xff] (!%p189_p2)  ;;  %v244_v8 = vand.u32 (!%p189_p2), 15, %v232_v4 }
   0xd   : > { %s1746_s26 = smov (!%p217_p3, %s917_s26), 3  ;;  %1236 = vmatpush3.bf16.msra.mxu0 %v1233_v5  ;;  %1312 = vmatpush3.bf16.msra.mxu1 %v1309_v23  ;;  %v577_v43 = vld [vmem:[%s1738_s3 + $0x48] sm:$0xff]  ;;  %v1253_v44 = vpack.c.bf16 %v280_v40, %v279_v39  ;;  %v282_v46 = vld [vmem:[%s1736_s1 + $0x38] sm:$0xff]  ;;  %v578_v48 = vld [vmem:[%s1738_s3 + $0x50] sm:$0xff] }
   0xe   : > { %s918_s8 = sshll.u32 %s1746_s26, 3  ;;  %1238 = vmatprep.subr.bf16.mxu0 %v1237_v9  ;;  %1314 = vmatprep.subr.bf16.mxu1 %v1313_v26  ;;  %v1325_v47 = vpack.c.bf16 %v577_v43, %v576_v42  ;;  %v579_v49 = vld [vmem:[%s1738_s3 + $0x58] sm:$0xff]  ;;  %v1257_v50 = vpack.c.bf16 %v282_v46, %v281_v45  ;;  %v933_v51 = vld [vmem:[%s1736_s1 + $0x80] sm:$0xff]  ;;  %v934_v52 = vld [vmem:[%s1736_s1 + $0x88] sm:$0xff]  ;;  %vm1604_vm4 = vcmp.eq.s32.totalorder %v244_v8, 15 }
   0xf   : > { %s220_s15 = scalar_lea.vmem %s1735_s0, %s918_s8  ;;  %v1329_v53 = vpack.c.bf16 %v579_v49, %v578_v48  ;;  %v580_v54 = vld [vmem:[%s1738_s3 + $0x60] sm:$0xff]  ;;  %v581_v55 = vld [vmem:[%s1738_s3 + $0x68] sm:$0xff]  ;;  %v1261_v58 = vpack.c.bf16 %v934_v52, %v933_v51  ;;  %v935_v59 = vld [vmem:[%s1736_s1 + $0x90] sm:$0xff]  ;;  %s226_s19 = scalar_lea.vmem %s1740_s5, %s918_s8 }
  0x10   : > { %v1469_v13 = vld [vmem:[%s220_s15] sm:$0xff]  ;;  %v1473_v15 = vld [vmem:[%s220_s15 + $0x8] sm:$0xff]  ;;  %v936_v60 = vld [vmem:[%s1736_s1 + $0x98] sm:$0xff]  ;;  %v1333_v61 = vpack.c.bf16 %v581_v55, %v580_v54 }
  0x11   : > { %1083 = vmatprep.mubr.msk.f32.mxu0 %vm292_vm0, %v1469_v13  ;;  %v259_v17 = vrot.slane %v1469_v13, 7  ;;  %v260_v20 = vrot.slane %v1473_v15, 7  ;;  %1240 = vmatpush3.bf16.msra.mxu0 %v1237_v9  ;;  %v268_v56 = vrot.slane %v1469_v13, 1  ;;  %v269_v57 = vrot.slane %v1473_v15, 1  ;;  %v937_v1 = vld [vmem:[%s1736_s1 + $0xa0] sm:$0xff]  ;;  %v938_v2 = vld [vmem:[%s1736_s1 + $0xa8] sm:$0xff]  ;;  %vm960_vm5 = vmneg %vm1509_vm2 }
  0x12   : > { %1242 = vmatprep.subr.bf16.mxu0 %v1241_v14  ;;  %1316 = vmatpush3.bf16.msra.mxu1 %v1313_v26  ;;  %v1265_v63 = vpack.c.bf16 %v936_v60, %v935_v59  ;;  %v1269_v3 = vpack.c.bf16 %v938_v2, %v937_v1  ;;  %v939_v5 = vld [vmem:[%s1736_s1 + $0xb0] sm:$0xff]  ;;  %v940_v6 = vld [vmem:[%s1736_s1 + $0xb8] sm:$0xff]  ;;  %v944_v9 = vld [vmem:[%s1738_s3 + $0x80] sm:$0xff] }
  0x13   : > { %v263_v33 = vsel %vm261_vm1, %v260_v20, %v259_v17  ;;  %1318 = vmatprep.subr.bf16.mxu1 %v1317_v34  ;;  %v262_v62 = vsel %vm261_vm1, %v259_v17, %v260_v20  ;;  %v271_v0 = vsel %vm270_vm3, %v268_v56, %v269_v57  ;;  %v1273_v7 = vpack.c.bf16 %v940_v6, %v939_v5  ;;  %v945_v10 = vld [vmem:[%s1738_s3 + $0x88] sm:$0xff]  ;;  %v947_v16 = vld [vmem:[%s1738_s3 + $0x98] sm:$0xff]  ;;  %v948_v19 = vld [vmem:[%s1738_s3 + $0xa0] sm:$0xff] }
  0x14   : > { %v264_v38 = vsel %vm1509_vm2, 0.0, %v263_v33  ;;  %v272_v13 = vsel %vm270_vm3, %v269_v57, %v268_v56  ;;  %v949_v20 = vld [vmem:[%s1738_s3 + $0xa8] sm:$0xff]  ;;  %v950_v22 = vld [vmem:[%s1738_s3 + $0xb0] sm:$0xff]  ;;  %v951_v23 = vld [vmem:[%s1738_s3 + $0xb8] sm:$0xff] }
  0x15   : > { %1244 = vmatpush3.bf16.msra.mxu0 %v1241_v14  ;;  %v1277_v14 = vpack.c.bf16 %v945_v10, %v944_v9  ;;  %v274_v17 = vsel %vm1604_vm4, 0.0, %v272_v13  ;;  %v1285_v21 = vpack.c.bf16 %v949_v20, %v948_v19  ;;  %v1289_v24 = vpack.c.bf16 %v951_v23, %v950_v22  ;;  %v952_v25 = vld [vmem:[%s1738_s3 + $0xc0] sm:$0xff]  ;;  %v953_v26 = vld [vmem:[%s1738_s3 + $0xc8] sm:$0xff]  ;;  %v954_v28 = vld [vmem:[%s1738_s3 + $0xd0] sm:$0xff] }
  0x16   : > { %1246 = vmatprep.subr.bf16.mxu0 %v1245_v29  ;;  %1320 = vmatpush3.bf16.msra.mxu1 %v1317_v34  ;;  %v1293_v27 = vpack.c.bf16 %v953_v26, %v952_v25  ;;  %v956_v31 = vld [vmem:[%s1738_s3 + $0xe0] sm:$0xff]  ;;  %v957_v33 = vld [vmem:[%s1738_s3 + $0xe8] sm:$0xff]  ;;  %v958_v35 = vld [vmem:[%s1738_s3 + $0xf0] sm:$0xff] }
  0x17   : > { %1322 = vmatprep.subr.bf16.mxu1 %v1321_v41  ;;  %v1301_v34 = vpack.c.bf16 %v957_v33, %v956_v31  ;;  %v959_v36 = vld [vmem:[%s1738_s3 + $0xf8] sm:$0xff]  ;;  %v963_v42 = vld [vmem:[%s1738_s3 + $0x108] sm:$0xff]  ;;  %v964_v49 = vld [vmem:[%s1738_s3 + $0x110] sm:$0xff] }
  0x18   : > { %1084 = vmatmul.mubr.msk.f32.vlgmr.msra.gmra.mrb[0].mxu0 %vm292_vm0, %v1473_v15  ;;  %v946_v15 = vld [vmem:[%s1738_s3 + $0x90] sm:$0xff]  ;;  %v583_v39 = vld [vmem:[%s1738_s3 + $0x78] sm:$0xff]  ;;  %v966_v32 = vld [vmem:[%s1738_s3 + $0x120] sm:$0xff] }
  0x19   : > { %1248 = vmatpush3.bf16.msra.mxu0 %v1245_v29  ;;  %1102 = vmatprep.mubr.msk.f32.mxu0 %vm292_vm0, %v264_v38  ;;  %v1281_v18 = vpack.c.bf16 %v947_v16, %v946_v15  ;;  %v955_v29 = vld [vmem:[%s1738_s3 + $0xd8] sm:$0xff]  ;;  %v582_v38 = vld [vmem:[%s1738_s3 + $0x70] sm:$0xff]  ;;  %v967_v60 = vld [vmem:[%s1738_s3 + $0x128] sm:$0xff] }
  0x1a   : > { %1250 = vmatprep.subr.bf16.mxu0 %v1249_v37  ;;  %1324 = vmatpush3.bf16.msra.mxu1 %v1321_v41  ;;  %v1297_v30 = vpack.c.bf16 %v955_v29, %v954_v28  ;;  %v1337_v40 = vpack.c.bf16 %v583_v39, %v582_v38  ;;  %v962_v41 = vld [vmem:[%s1738_s3 + $0x100] sm:$0xff]  ;;  %v969_v12 = vld [vmem:[%s1738_s3 + $0x138] sm:$0xff]  ;;  %v971_v1 = vld [vmem:[%s1738_s3 + $0x148] sm:$0xff] }
  0x1b   : > { %1326 = vmatprep.subr.bf16.mxu1 %v1325_v47  ;;  %v1341_v43 = vpack.c.bf16 %v963_v42, %v962_v41  ;;  %v973_v4 = vld [vmem:[%s1738_s3 + $0x158] sm:$0xff]  ;;  %v974_v6 = vld [vmem:[%s1738_s3 + $0x160] sm:$0xff]  ;;  %v976_v9 = vld [vmem:[%s1738_s3 + $0x170] sm:$0xff] }
  0x1c   : > { %v977_v10 = vld [vmem:[%s1738_s3 + $0x178] sm:$0xff]  ;;  %vm978_vm6 = vmneg %vm1604_vm4 }
  0x1d   : > { %1252 = vmatpush3.bf16.msra.mxu0 %v1249_v37  ;;  %v1305_v37 = vpack.c.bf16 %v959_v36, %v958_v35  ;;  %v1369_v13 = vpack.c.bf16 %v977_v10, %v976_v9 }
  0x1e   : > { %1254 = vmatprep.subr.bf16.mxu0 %v1253_v44  ;;  %1328 = vmatpush3.bf16.msra.mxu1 %v1325_v47 }
  0x1f   : > { %1330 = vmatprep.subr.bf16.mxu1 %v1329_v53 }
  0x21   : > { %1256 = vmatpush3.bf16.msra.mxu0 %v1253_v44  ;;  %v943_v44 = vld [vmem:[%s1737_s2] ss:$0 sm:$0xff] }
  0x22   : > { %1258 = vmatprep.subr.bf16.mxu0 %v1257_v50  ;;  %1332 = vmatpush3.bf16.msra.mxu1 %v1329_v53 }
  0x23   : > { %1334 = vmatprep.subr.bf16.mxu1 %v1333_v61 }
  0x25   : > { %1260 = vmatpush3.bf16.msra.mxu0 %v1257_v50  ;;  %v965_v50 = vld [vmem:[%s1738_s3 + $0x118] sm:$0xff] }
  0x26   : > { %1262 = vmatprep.subr.bf16.mxu0 %v1261_v58  ;;  %1336 = vmatpush3.bf16.msra.mxu1 %v1333_v61  ;;  %v1345_v55 = vpack.c.bf16 %v965_v50, %v964_v49  ;;  %v1349_v61 = vpack.c.bf16 %v967_v60, %v966_v32 }
  0x27   : > { %1338 = vmatprep.subr.bf16.mxu1 %v1337_v40 }
  0x28   : > { %1103 = vmatmul.mubr.msk.f32.vlgmr.msra.gmra.mrb[0].mxu0 %vm292_vm0, %v262_v62  ;;  %v968_v62 = vld [vmem:[%s1738_s3 + $0x130] sm:$0xff] }
  0x29   : > { %1264 = vmatpush3.bf16.msra.mxu0 %v1261_v58  ;;  %1121 = vmatprep.mubr.msk.f32.mxu0 %vm292_vm0, %v271_v0  ;;  %v970_v0 = vld [vmem:[%s1738_s3 + $0x140] sm:$0xff] }
  0x2a   : > { %1266 = vmatprep.subr.bf16.mxu0 %v1265_v63  ;;  %1340 = vmatpush3.bf16.msra.mxu1 %v1337_v40  ;;  %v1357_v2 = vpack.c.bf16 %v971_v1, %v970_v0 }
  0x2b   : > { %1342 = vmatprep.subr.bf16.mxu1 %v1341_v43 }
  0x2d   : > { %1268 = vmatpush3.bf16.msra.mxu0 %v1265_v63  ;;  %v1353_v63 = vpack.c.bf16 %v969_v12, %v968_v62 }
  0x2e   : > { %1270 = vmatprep.subr.bf16.mxu0 %v1269_v3 }
  0x31   : > { %1272 = vmatpush3.bf16.msra.mxu0 %v1269_v3  ;;  %v972_v3 = vld [vmem:[%s1738_s3 + $0x150] sm:$0xff] }
  0x32   : > { %1274 = vmatprep.subr.bf16.mxu0 %v1273_v7  ;;  %v1361_v5 = vpack.c.bf16 %v973_v4, %v972_v3 }
  0x35   : > { %1276 = vmatpush3.bf16.msra.mxu0 %v1273_v7  ;;  %v975_v7 = vld [vmem:[%s1738_s3 + $0x168] sm:$0xff] }
  0x36   : > { %1278 = vmatprep.subr.bf16.mxu0 %v1277_v14  ;;  %v1365_v8 = vpack.c.bf16 %v975_v7, %v974_v6 }
  0x38   : > { %1122 = vmatmul.mubr.msk.f32.vlgmr.msra.gmra.mrb[0].mxu0 %vm292_vm0, %v274_v17 }
  0x39   : > { %1280 = vmatpush3.bf16.msra.mxu0 %v1277_v14 }
  0x3a   : > { %1282 = vmatprep.subr.bf16.mxu0 %v1281_v18 }
  0x3d   : > { %1284 = vmatpush3.bf16.msra.mxu0 %v1281_v18  ;;  %v980_v18 = vld [vmem:[%s1739_s4] ss:$0 sm:$0xff] }
  0x3e   : > { %1286 = vmatprep.subr.bf16.mxu0 %v1285_v21 }
  0x41   : > { %1288 = vmatpush3.bf16.msra.mxu0 %v1285_v21 }
  0x42   : > { %1290 = vmatprep.subr.bf16.mxu0 %v1289_v24 }
  0x45   : > { %1292 = vmatpush3.bf16.msra.mxu0 %v1289_v24 }
  0x46   : > { %1294 = vmatprep.subr.bf16.mxu0 %v1293_v27 }
  0x49   : > { %1296 = vmatpush3.bf16.msra.mxu0 %v1293_v27 }
  0x4a   : > { %1298 = vmatprep.subr.bf16.mxu0 %v1297_v30 }
  0x4d   : > { %1300 = vmatpush3.bf16.msra.mxu0 %v1297_v30 }
  0x4e   : > { %1302 = vmatprep.subr.bf16.mxu0 %v1301_v34 }
  0x51   : > { %1304 = vmatpush3.bf16.msra.mxu0 %v1301_v34 }
  0x52   : > { %1306 = vmatprep.subr.bf16.mxu0 %v1305_v37 }
  0x55   : > { %1308 = vmatpush3.bf16.msra.mxu0 %v1305_v37 }
 0x10b   : > { %v1123_v45 = vpop.f32.mrb[0].mxu0 }
 0x10c   : > { %v555_v46 = vadd.f32 %v1123_v45, %v943_v44  ;;  %v536_v47 = vpop.f32.mrb[1].mxu0 }
 0x10d   : > { %v554_v48 = vadd.f32 %v943_v44, %v536_v47 }
 0x10e   : > { %v563_v51 = vrot.slane %v555_v46, 1  ;;  %v557_v52 = vrot.slane %v555_v46, 7 }
 0x10f   : > { %v562_v53 = vrot.slane %v554_v48, 1  ;;  %1156 = vmatprep.mubr.f32.mxu0 %v554_v48  ;;  %v556_v54 = vrot.slane %v554_v48, 7 }
 0x110   : > { %1157 = vmatmul.mubr.f32.vlgmr.msra.gmra.mrb[2].mxu0 %v555_v46 }
 0x111   : > { %v559_v56 = vsel %vm261_vm1, %v557_v52, %v556_v54  ;;  %v558_v57 = vsel %vm261_vm1, %v556_v54, %v557_v52  ;;  %v564_v58 = vsel %vm270_vm3, %v562_v53, %v563_v51  ;;  %v565_v59 = vsel %vm270_vm3, %v563_v51, %v562_v53 }
 0x112   : > { %1191 = vmatprep.mubr.msk.f32.mxu1 %vm960_vm5, %v559_v56 }
 0x113   : > { %1192 = vmatmul.mubr.f32.vlgmr.msra.gmra.mrb[0].mxu1 %v558_v57 }
 0x114   : > { %1344 = vmatpush3.bf16.msra.mxu1 %v1341_v43  ;;  %1226 = vmatprep.mubr.f32.mxu1 %v564_v58 }
 0x115   : > { %1346 = vmatprep.subr.bf16.mxu1 %v1345_v55 }
 0x118   : > { %1348 = vmatpush3.bf16.msra.mxu1 %v1345_v55 }
 0x119   : > { %1350 = vmatprep.subr.bf16.mxu1 %v1349_v61 }
 0x11c   : > { %1352 = vmatpush3.bf16.msra.mxu1 %v1349_v61 }
 0x11d   : > { %1354 = vmatprep.subr.bf16.mxu1 %v1353_v63 }
 0x120   : > { %1356 = vmatpush3.bf16.msra.mxu1 %v1353_v63 }
 0x121   : > { %1358 = vmatprep.subr.bf16.mxu1 %v1357_v2 }
 0x124   : > { %1360 = vmatpush3.bf16.msra.mxu1 %v1357_v2 }
 0x125   : > { %1362 = vmatprep.subr.bf16.mxu1 %v1361_v5 }
 0x128   : > { %1364 = vmatpush3.bf16.msra.mxu1 %v1361_v5 }
 0x129   : > { %1366 = vmatprep.subr.bf16.mxu1 %v1365_v8 }
 0x12c   : > { %1368 = vmatpush3.bf16.msra.mxu1 %v1365_v8 }
 0x12d   : > { %1370 = vmatprep.subr.bf16.mxu1 %v1369_v13 }
 0x130   : > { %1372 = vmatpush3.bf16.msra.mxu1 %v1369_v13 }
 0x133   : > { %1227 = vmatmul.mubr.msk.f32.vlgmr.msra.gmra.mrb[0].mxu1 %vm978_vm6, %v565_v59 }
 0x1e3   : > { %v1158_v14 = vpop.f32.mrb[2].mxu0 }
 0x1e4   : > { %v667_v15 = vpop.f32.mrb[3].mxu0 }
 0x206   : > { %v1228_v16 = vpop.f32.mrb[0].mxu1 }
 0x207   : > { %v1373_v17 = vadd.f32 %v1228_v16, %v1158_v14  ;;  %v834_v19 = vpop.f32.mrb[1].mxu1 }
 0x208   : > { %v1374_v20 = vadd.f32 %v834_v19, %v667_v15 }
 0x209   : > { %v853_v22 = vadd.f32 %v1373_v17, %v980_v18 }
 0x20a   : > { %v852_v21 = vadd.f32 %v1374_v20, %v980_v18 }
 0x20b   : > { %855 = vst [vmem:[%s226_s19 + $0x8] sm:$0xff] %v853_v22 }
 0x20c   : > { %854 = vst [vmem:[%s226_s19] sm:$0xff] %v852_v21 }
 0x20d PF: > { %s15_s18 = sadd.s32 1, %s1395_s18  }
 0x20e   : > { %p12_p4 = scmp.ge.s32.totalorder %s15_s18, 4  }
 0x210   :  { %14 = sbr.rel (!%p12_p4) target bundleno = 1 (0x1), region = 74 }

</bundles_post_ra>
